<compile_context>
chip_gen: v6e
topology: v6e:2x2x1
jax: 0.10.0
libtpu: 0.0.40
codegen_flags: <defaults>
</compile_context>

<pallas_src>
import math

import jax
import jax.numpy as jnp
from jax.experimental import pallas as pl
from jax.experimental.pallas import tpu as pltpu

_LANE = 128
_VMEM_LIMIT = 48 * 1024 * 1024          # <= v7x physical 64 MiB per TC
_RESIDENT_SUPPORT_BYTES = 6 * 1024 * 1024   # x2 buffering still <= 12 MiB
_SUPPORT_X_TILE_BYTES = 8 * 1024 * 1024     # bf16 x tile, double buffered


def _round_up(x, m):
    return (x + m - 1) // m * m


def _pick_tile(n_pad, cap, min_steps=1):
    """Largest power-of-two multiple of 128 that divides n_pad, is <= cap,
    and leaves at least `min_steps` grid steps along that axis."""
    t = 128
    while (t * 2 <= cap
           and n_pad % (t * 2) == 0
           and n_pad // (t * 2) >= min_steps):
        t *= 2
    return t


def _pick_support_tm(n_pad, f_in):
    """Row tile for x @ W such that the double-buffered bf16 x tile stays
    within a fixed VMEM budget regardless of nfeat."""
    t = _pick_tile(n_pad, 512)
    while t > 128 and 2 * (t * f_in * 2) > _SUPPORT_X_TILE_BYTES:
        t //= 2
    return t


# ---------------------------------------------------------------------------
# Kernel 1: support = x @ W   (computed once, tiled only over node rows)
# ---------------------------------------------------------------------------
def _support_kernel(x_ref, w_ref, o_ref):
    o_ref[...] = jnp.dot(
        x_ref[...], w_ref[...], preferred_element_type=jnp.float32
    ).astype(o_ref.dtype)


def _support_matmul(x, w, *, tm, out_dtype):
    n, f_in = x.shape
    f_out = w.shape[1]
    assert n % tm == 0
    return pl.pallas_call(
        _support_kernel,
        out_shape=jax.ShapeDtypeStruct((n, f_out), out_dtype),
        grid_spec=pltpu.PrefetchScalarGridSpec(
            num_scalar_prefetch=0,
            grid=(n // tm,),
            in_specs=[
                pl.BlockSpec((tm, f_in), lambda i: (i, 0)),      # x row tile
                pl.BlockSpec((f_in, f_out), lambda i: (0, 0)),   # W (full)
            ],
            out_specs=pl.BlockSpec((tm, f_out), lambda i: (i, 0)),
        ),
        compiler_params=pltpu.CompilerParams(
            dimension_semantics=("parallel",),
            vmem_limit_bytes=_VMEM_LIMIT,
        ),
    )(x, w)


# ---------------------------------------------------------------------------
# Kernel 2: out = relu(adj @ support + b), contraction over nodes tiled (tk)
# ---------------------------------------------------------------------------
def _make_aggregate_kernel(tk, resident):
    def kernel(adj_ref, s_ref, b_ref, o_ref, acc_ref):
        k = pl.program_id(1)

        @pl.when(k == 0)
        def _():
            acc_ref[...] = jnp.zeros_like(acc_ref)

        if resident:
            # Whole support lives in VMEM; slice the K tile in-kernel.
            start = pl.multiple_of(k * tk, tk)
            s_tile = s_ref[pl.ds(start, tk), :]
        else:
            s_tile = s_ref[...]

        acc_ref[...] += jnp.dot(
            adj_ref[...], s_tile, preferred_element_type=jnp.float32
        )

        @pl.when(k == pl.num_programs(1) - 1)
        def _():
            o_ref[...] = jnp.maximum(
                acc_ref[...] + b_ref[...], 0.0).astype(o_ref.dtype)

    return kernel


def _aggregate(adj, support, b, *, tm, tk, out_dtype):
    n = adj.shape[0]
    f_out = support.shape[1]
    assert n % tm == 0 and n % tk == 0

    s_bytes = support.size * support.dtype.itemsize
    resident = s_bytes <= _RESIDENT_SUPPORT_BYTES
    if resident:
        # Full-array block, same index for every grid step -> fetched once,
        # no repeated HBM reads across row tiles.
        s_spec = pl.BlockSpec((n, f_out), lambda i, k: (0, 0))
    else:
        s_spec = pl.BlockSpec((tk, f_out), lambda i, k: (k, 0))

    return pl.pallas_call(
        _make_aggregate_kernel(tk, resident),
        out_shape=jax.ShapeDtypeStruct((n, f_out), out_dtype),
        grid_spec=pltpu.PrefetchScalarGridSpec(
            num_scalar_prefetch=0,
            grid=(n // tm, n // tk),
            in_specs=[
                pl.BlockSpec((tm, tk), lambda i, k: (i, k)),     # adj tile
                s_spec,                                          # support
                pl.BlockSpec((1, f_out), lambda i, k: (0, 0)),   # bias
            ],
            out_specs=pl.BlockSpec((tm, f_out), lambda i, k: (i, 0)),
            scratch_shapes=[pltpu.VMEM((tm, f_out), jnp.float32)],
        ),
        compiler_params=pltpu.CompilerParams(
            dimension_semantics=("parallel", "arbitrary"),
            vmem_limit_bytes=_VMEM_LIMIT,
        ),
    )(adj, support, b)


# ---------------------------------------------------------------------------
# One GraphConvolution layer (+ fused ReLU) on node-padded inputs
# ---------------------------------------------------------------------------
def gcn_layer(x_pad, adj_pad_bf16, w, b, *, tm, tk, out_dtype=jnp.float32):
    """relu(adj @ (x @ w) + b).

    x_pad:        (n_pad, f_in)  node-padded features (padded cols are 0)
    adj_pad_bf16: (n_pad, n_pad) node-padded adjacency, bf16, zeros in padding
    w: (f_in_w, f_out) f32 with f_in_w <= f_in,  b: (f_out,) f32
    Returns (n_pad, f_out_pad) with f_out zero-padded up to a multiple of 128.
    """
    n_pad, f_in = x_pad.shape
    f_in_w, f_out = w.shape
    assert f_in_w <= f_in
    f_out_pad = _round_up(f_out, _LANE)

    # Zero-pad weight rows (up to the padded activation width) and output
    # columns/bias lanes: padded output columns are exactly 0, so they can
    # feed the next layer whose padded weight rows are also 0.
    w_pad = jnp.zeros((f_in, f_out_pad), jnp.bfloat16)
    w_pad = w_pad.at[:f_in_w, :f_out].set(w.astype(jnp.bfloat16))
    b_pad = jnp.zeros((1, f_out_pad), jnp.float32)
    b_pad = b_pad.at[:, :f_out].set(b.reshape(1, f_out).astype(jnp.float32))

    tm_s = _pick_support_tm(n_pad, f_in)
    support = _support_matmul(
        x_pad.astype(jnp.bfloat16), w_pad, tm=tm_s, out_dtype=jnp.bfloat16)
    return _aggregate(
        adj_pad_bf16, support, b_pad, tm=tm, tk=tk, out_dtype=out_dtype)


def gcn_en2_forward(x, adj, params, dropout_rate, training=False):
    """GCN_En2.forward:
         x = relu(gc1(x, adj)); x = dropout(x)
         x = relu(gc2(x, adj)); x = dropout(x)
    """
    w1, b1, w2, b2 = params
    n, f_in = x.shape
    nembed = w2.shape[1]

    # Pad node count to a multiple of 128 only; pick tiles that divide n_pad.
    n_pad = _round_up(n, _LANE)
    tm = _pick_tile(n_pad, 512, min_steps=2)   # keep >=2 row tiles (v7x 2 TCs)
    tk = _pick_tile(n_pad, 2048)               # power-of-2 >=128 (mult of 256)

    x_pad = jnp.zeros((n_pad, f_in), jnp.float32).at[:n, :].set(
        x.astype(jnp.float32))
    adj_pad = jnp.zeros((n_pad, n_pad), jnp.bfloat16).at[:n, :n].set(
        adj.astype(jnp.bfloat16))

    # Layer 1: intermediate activation kept in bf16 (halves HBM traffic; it is
    # cast to bf16 for the layer-2 MXU anyway).
    h = gcn_layer(x_pad, adj_pad, w1, b1, tm=tm, tk=tk, out_dtype=jnp.bfloat16)
    # TODO(synk): training-mode dropout (pltpu.prng_* Bernoulli mask) not
    # implemented; training=False matches module.eval() (F.dropout identity).
    h = gcn_layer(h, adj_pad, w2, b2, tm=tm, tk=tk, out_dtype=jnp.float32)

    # Slice padded node rows and padded feature lanes back off.
    return h[:n, :nembed]


def init_gcn_en2_params(key, nfeat, nhid, nembed):
    """Deterministic init matching GraphConvolution.reset_parameters:
       uniform(-1/sqrt(out_features), 1/sqrt(out_features))."""
    k1, k2, k3, k4 = jax.random.split(key, 4)
    stdv1 = 1.0 / math.sqrt(nhid)
    stdv2 = 1.0 / math.sqrt(nembed)
    w1 = jax.random.uniform(k1, (nfeat, nhid), jnp.float32, -stdv1, stdv1)
    b1 = jax.random.uniform(k2, (nhid,), jnp.float32, -stdv1, stdv1)
    w2 = jax.random.uniform(k3, (nhid, nembed), jnp.float32, -stdv2, stdv2)
    b2 = jax.random.uniform(k4, (nembed,), jnp.float32, -stdv2, stdv2)
    return (w1, b1, w2, b2)


def _reference(x, adj, params):
    """Pure-JAX reference mimicking the kernel's bf16-input / f32-accumulate
    math (so the comparison tolerance can stay tight)."""
    w1, b1, w2, b2 = params
    bf16 = jnp.bfloat16
    adj_b = adj.astype(bf16)

    def layer(h, w, b):
        s = jnp.dot(h.astype(bf16), w.astype(bf16),
                    preferred_element_type=jnp.float32).astype(bf16)
        o = jnp.dot(adj_b, s, preferred_element_type=jnp.float32)
        return jnp.maximum(o + b, 0.0)

    h1 = layer(x, w1, b1).astype(bf16)   # intermediate stored as bf16
    return layer(h1, w2, b2)


if __name__ == "__main__":
    # Small shapes consistent with the module: N nodes, nfeat -> nhid -> nembed
    N, nfeat, nhid, nembed = 64, 32, 32, 16
    dropout = 0.5

    key = jax.random.PRNGKey(0)
    kx, kadj, kp = jax.random.split(key, 3)

    x = jax.random.normal(kx, (N, nfeat), jnp.float32)

    # Symmetric, row-normalized dense adjacency (acts like spmm's dense adj)
    a = jax.random.uniform(kadj, (N, N), jnp.float32)
    a = (a > 0.8).astype(jnp.float32)
    adj = a + a.T + jnp.eye(N, dtype=jnp.float32)
    adj = adj / jnp.sum(adj, axis=1, keepdims=True)

    params = init_gcn_en2_params(kp, nfeat, nhid, nembed)

    fwd = jax.jit(gcn_en2_forward, static_argnames=("training",))
    out = jax.block_until_ready(fwd(x, adj, params, dropout, training=False))

    ref = _reference(x, adj, params)
    assert out.shape == (N, nembed)
    assert out.dtype == jnp.float32
    assert jnp.allclose(out, ref, atol=5e-3, rtol=5e-3), "mismatch vs reference"

    print("KERNEL_OK")
</pallas_src>

<mosaic_0001>
module attributes {stable_mosaic.version = 11 : i64} {
  func.func @_support_kernel(%arg0: i32, %arg1: memref<128x32xbf16, #tpu.memory_space<vmem>>, %arg2: memref<32x128xbf16, #tpu.memory_space<vmem>>, %arg3: memref<128x128xbf16, #tpu.memory_space<vmem>>) attributes {dimension_semantics = [#tpu.dimension_semantics<parallel>], iteration_bounds = array<i64: 1>, scalar_prefetch = 0 : i64, scratch_operands = 0 : i64, tpu.core_type = #tpu.core_type<tc>, window_params = [{transform_indices = @transform_0, window_bounds = array<i64: 128, 32>}, {pipeline_mode = #tpu.pipeline_mode<synchronous>, transform_indices = @transform_1, window_bounds = array<i64: 32, 128>}, {transform_indices = @transform_2, window_bounds = array<i64: 128, 128>}]} {
    %c0 = arith.constant 0 : index
    %c0_0 = arith.constant 0 : index
    %0 = vector.load %arg1[%c0, %c0_0] : memref<128x32xbf16, #tpu.memory_space<vmem>>, vector<128x32xbf16>
    %c0_1 = arith.constant 0 : index
    %c0_2 = arith.constant 0 : index
    %1 = vector.load %arg2[%c0_1, %c0_2] : memref<32x128xbf16, #tpu.memory_space<vmem>>, vector<32x128xbf16>
    %cst = arith.constant dense<0.000000e+00> : vector<128x128xf32>
    %2 = tpu.matmul %0, %1, %cst {dimension_numbers = #tpu.dot_dimension_numbers<[1], [0], [0], [1], [0, 0, 1, 1], [], []>} : vector<128x32xbf16>, vector<32x128xbf16>, vector<128x128xf32> -> vector<128x128xf32>
    %3 = arith.truncf %2 : vector<128x128xf32> to vector<128x128xbf16>
    %c0_3 = arith.constant 0 : index
    %c0_4 = arith.constant 0 : index
    %4 = vector.load %arg3[%c0_3, %c0_4] : memref<128x128xbf16, #tpu.memory_space<vmem>>, vector<128x128xbf16>
    tpu.vector_store %arg3[%c0_3, %c0_4], %3 {strides = array<i32>} : memref<128x128xbf16, #tpu.memory_space<vmem>>, vector<128x128xbf16>,
    return
  }
  func.func @transform_0(%arg0: i32) -> (i32, i32) {
    %c0_i32 = arith.constant 0 : i32
    %c0_i32_0 = arith.constant 0 : i32
    return %arg0, %c0_i32 : i32, i32
  }
  func.func @transform_1(%arg0: i32) -> (i32, i32) {
    %c0_i32 = arith.constant 0 : i32
    %c0_i32_0 = arith.constant 0 : i32
    %c0_i32_1 = arith.constant 0 : i32
    return %c0_i32, %c0_i32_0 : i32, i32
  }
  func.func @transform_2(%arg0: i32) -> (i32, i32) {
    %c0_i32 = arith.constant 0 : i32
    %c0_i32_0 = arith.constant 0 : i32
    return %arg0, %c0_i32 : i32, i32
  }
}

module attributes {stable_mosaic.version = 11 : i64} {
  func.func @kernel(%arg0: i32, %arg1: i32, %arg2: memref<128x128xbf16, #tpu.memory_space<vmem>>, %arg3: memref<128x128xbf16, #tpu.memory_space<vmem>>, %arg4: memref<1x128xf32, #tpu.memory_space<vmem>>, %arg5: memref<128x128xbf16, #tpu.memory_space<vmem>>, %arg6: memref<128x128xf32, #tpu.memory_space<vmem>>) attributes {dimension_semantics = [#tpu.dimension_semantics<parallel>, #tpu.dimension_semantics<arbitrary>], iteration_bounds = array<i64: 1, 1>, scalar_prefetch = 0 : i64, scratch_operands = 1 : i64, tpu.core_type = #tpu.core_type<tc>, window_params = [{transform_indices = @transform_0, window_bounds = array<i64: 128, 128>}, {pipeline_mode = #tpu.pipeline_mode<synchronous>, transform_indices = @transform_1, window_bounds = array<i64: 128, 128>}, {pipeline_mode = #tpu.pipeline_mode<synchronous>, transform_indices = @transform_2, window_bounds = array<i64: 1, 128>}, {transform_indices = @transform_3, window_bounds = array<i64: 128, 128>}]} {
    %c0_i32 = arith.constant 0 : i32
    %0 = arith.cmpi eq, %arg1, %c0_i32 : i32
    %1 = arith.extui %0 : i1 to i32
    %c0_i32_0 = arith.constant 0 : i32
    %2 = arith.cmpi ne, %1, %c0_i32_0 : i32
    scf.if %2 {
      %cst_9 = arith.constant 0.000000e+00 : f32
      %15 = vector.broadcast %cst_9 : f32 to vector<128x128xf32>
      %c0_10 = arith.constant 0 : index
      %c0_11 = arith.constant 0 : index
      %16 = vector.load %arg6[%c0_10, %c0_11] : memref<128x128xf32, #tpu.memory_space<vmem>>, vector<128x128xf32>
      tpu.vector_store %arg6[%c0_10, %c0_11], %15 {strides = array<i32>} : memref<128x128xf32, #tpu.memory_space<vmem>>, vector<128x128xf32>,
    } else {
    }
    %c128_i32 = arith.constant 128 : i32
    %3 = arith.muli %arg1, %c128_i32 : i32
    %4 = tpu.assume_multiple %3, 128 : i32
    %5 = arith.index_cast %4 : i32 to index
    %c0 = arith.constant 0 : index
    %6 = vector.load %arg3[%5, %c0] : memref<128x128xbf16, #tpu.memory_space<vmem>>, vector<128x128xbf16>
    %c0_1 = arith.constant 0 : index
    %c0_2 = arith.constant 0 : index
    %7 = vector.load %arg6[%c0_1, %c0_2] : memref<128x128xf32, #tpu.memory_space<vmem>>, vector<128x128xf32>
    %c0_3 = arith.constant 0 : index
    %c0_4 = arith.constant 0 : index
    %8 = vector.load %arg2[%c0_3, %c0_4] : memref<128x128xbf16, #tpu.memory_space<vmem>>, vector<128x128xbf16>
    %cst = arith.constant dense<0.000000e+00> : vector<128x128xf32>
    %9 = tpu.matmul %8, %6, %cst {dimension_numbers = #tpu.dot_dimension_numbers<[1], [0], [0], [1], [0, 0, 1, 1], [], []>} : vector<128x128xbf16>, vector<128x128xbf16>, vector<128x128xf32> -> vector<128x128xf32>
    %10 = arith.addf %7, %9 : vector<128x128xf32>
    %c0_5 = arith.constant 0 : index
    %c0_6 = arith.constant 0 : index
    %11 = vector.load %arg6[%c0_5, %c0_6] : memref<128x128xf32, #tpu.memory_space<vmem>>, vector<128x128xf32>
    tpu.vector_store %arg6[%c0_5, %c0_6], %10 {strides = array<i32>} : memref<128x128xf32, #tpu.memory_space<vmem>>, vector<128x128xf32>,
    %c0_i32_7 = arith.constant 0 : i32
    %12 = arith.cmpi eq, %arg1, %c0_i32_7 : i32
    %13 = arith.extui %12 : i1 to i32
    %c0_i32_8 = arith.constant 0 : i32
    %14 = arith.cmpi ne, %13, %c0_i32_8 : i32
    scf.if %14 {
      %c0_9 = arith.constant 0 : index
      %c0_10 = arith.constant 0 : index
      %15 = vector.load %arg6[%c0_9, %c0_10] : memref<128x128xf32, #tpu.memory_space<vmem>>, vector<128x128xf32>
      %c0_11 = arith.constant 0 : index
      %c0_12 = arith.constant 0 : index
      %16 = vector.load %arg4[%c0_11, %c0_12] : memref<1x128xf32, #tpu.memory_space<vmem>>, vector<1x128xf32>
      %17 = vector.broadcast %16 : vector<1x128xf32> to vector<128x128xf32>
      %18 = arith.addf %15, %17 : vector<128x128xf32>
      %cst_13 = arith.constant 0.000000e+00 : f32
      %19 = vector.broadcast %cst_13 : f32 to vector<128x128xf32>
      %20 = arith.maximumf %18, %19 : vector<128x128xf32>
      %21 = arith.truncf %20 : vector<128x128xf32> to vector<128x128xbf16>
      %c0_14 = arith.constant 0 : index
      %c0_15 = arith.constant 0 : index
      %22 = vector.load %arg5[%c0_14, %c0_15] : memref<128x128xbf16, #tpu.memory_space<vmem>>, vector<128x128xbf16>
      tpu.vector_store %arg5[%c0_14, %c0_15], %21 {strides = array<i32>} : memref<128x128xbf16, #tpu.memory_space<vmem>>, vector<128x128xbf16>,
    } else {
    }
    return
  }
  func.func @transform_0(%arg0: i32, %arg1: i32) -> (i32, i32) {
    %c0_i32 = arith.constant 0 : i32
    return %arg0, %arg1 : i32, i32
  }
  func.func @transform_1(%arg0: i32, %arg1: i32) -> (i32, i32) {
    %c0_i32 = arith.constant 0 : i32
    %c0_i32_0 = arith.constant 0 : i32
    %c0_i32_1 = arith.constant 0 : i32
    return %c0_i32, %c0_i32_0 : i32, i32
  }
  func.func @transform_2(%arg0: i32, %arg1: i32) -> (i32, i32) {
    %c0_i32 = arith.constant 0 : i32
    %c0_i32_0 = arith.constant 0 : i32
    %c0_i32_1 = arith.constant 0 : i32
    return %c0_i32, %c0_i32_0 : i32, i32
  }
  func.func @transform_3(%arg0: i32, %arg1: i32) -> (i32, i32) {
    %c0_i32 = arith.constant 0 : i32
    %c0_i32_0 = arith.constant 0 : i32
    return %arg0, %c0_i32 : i32, i32
  }
}

module attributes {stable_mosaic.version = 11 : i64} {
  func.func @_support_kernel(%arg0: i32, %arg1: memref<128x128xbf16, #tpu.memory_space<vmem>>, %arg2: memref<128x128xbf16, #tpu.memory_space<vmem>>, %arg3: memref<128x128xbf16, #tpu.memory_space<vmem>>) attributes {dimension_semantics = [#tpu.dimension_semantics<parallel>], iteration_bounds = array<i64: 1>, scalar_prefetch = 0 : i64, scratch_operands = 0 : i64, tpu.core_type = #tpu.core_type<tc>, window_params = [{transform_indices = @transform_0, window_bounds = array<i64: 128, 128>}, {pipeline_mode = #tpu.pipeline_mode<synchronous>, transform_indices = @transform_1, window_bounds = array<i64: 128, 128>}, {transform_indices = @transform_2, window_bounds = array<i64: 128, 128>}]} {
    %c0 = arith.constant 0 : index
    %c0_0 = arith.constant 0 : index
    %0 = vector.load %arg1[%c0, %c0_0] : memref<128x128xbf16, #tpu.memory_space<vmem>>, vector<128x128xbf16>
    %c0_1 = arith.constant 0 : index
    %c0_2 = arith.constant 0 : index
    %1 = vector.load %arg2[%c0_1, %c0_2] : memref<128x128xbf16, #tpu.memory_space<vmem>>, vector<128x128xbf16>
    %cst = arith.constant dense<0.000000e+00> : vector<128x128xf32>
    %2 = tpu.matmul %0, %1, %cst {dimension_numbers = #tpu.dot_dimension_numbers<[1], [0], [0], [1], [0, 0, 1, 1], [], []>} : vector<128x128xbf16>, vector<128x128xbf16>, vector<128x128xf32> -> vector<128x128xf32>
    %3 = arith.truncf %2 : vector<128x128xf32> to vector<128x128xbf16>
    %c0_3 = arith.constant 0 : index
    %c0_4 = arith.constant 0 : index
    %4 = vector.load %arg3[%c0_3, %c0_4] : memref<128x128xbf16, #tpu.memory_space<vmem>>, vector<128x128xbf16>
    tpu.vector_store %arg3[%c0_3, %c0_4], %3 {strides = array<i32>} : memref<128x128xbf16, #tpu.memory_space<vmem>>, vector<128x128xbf16>,
    return
  }
  func.func @transform_0(%arg0: i32) -> (i32, i32) {
    %c0_i32 = arith.constant 0 : i32
    %c0_i32_0 = arith.constant 0 : i32
    return %arg0, %c0_i32 : i32, i32
  }
  func.func @transform_1(%arg0: i32) -> (i32, i32) {
    %c0_i32 = arith.constant 0 : i32
    %c0_i32_0 = arith.constant 0 : i32
    %c0_i32_1 = arith.constant 0 : i32
    return %c0_i32, %c0_i32_0 : i32, i32
  }
  func.func @transform_2(%arg0: i32) -> (i32, i32) {
    %c0_i32 = arith.constant 0 : i32
    %c0_i32_0 = arith.constant 0 : i32
    return %arg0, %c0_i32 : i32, i32
  }
}

module attributes {stable_mosaic.version = 11 : i64} {
  func.func @kernel(%arg0: i32, %arg1: i32, %arg2: memref<128x128xbf16, #tpu.memory_space<vmem>>, %arg3: memref<128x128xbf16, #tpu.memory_space<vmem>>, %arg4: memref<1x128xf32, #tpu.memory_space<vmem>>, %arg5: memref<128x128xf32, #tpu.memory_space<vmem>>, %arg6: memref<128x128xf32, #tpu.memory_space<vmem>>) attributes {dimension_semantics = [#tpu.dimension_semantics<parallel>, #tpu.dimension_semantics<arbitrary>], iteration_bounds = array<i64: 1, 1>, scalar_prefetch = 0 : i64, scratch_operands = 1 : i64, tpu.core_type = #tpu.core_type<tc>, window_params = [{transform_indices = @transform_0, window_bounds = array<i64: 128, 128>}, {pipeline_mode = #tpu.pipeline_mode<synchronous>, transform_indices = @transform_1, window_bounds = array<i64: 128, 128>}, {pipeline_mode = #tpu.pipeline_mode<synchronous>, transform_indices = @transform_2, window_bounds = array<i64: 1, 128>}, {transform_indices = @transform_3, window_bounds = array<i64: 128, 128>}]} {
    %c0_i32 = arith.constant 0 : i32
    %0 = arith.cmpi eq, %arg1, %c0_i32 : i32
    %1 = arith.extui %0 : i1 to i32
    %c0_i32_0 = arith.constant 0 : i32
    %2 = arith.cmpi ne, %1, %c0_i32_0 : i32
    scf.if %2 {
      %cst_9 = arith.constant 0.000000e+00 : f32
      %15 = vector.broadcast %cst_9 : f32 to vector<128x128xf32>
      %c0_10 = arith.constant 0 : index
      %c0_11 = arith.constant 0 : index
      %16 = vector.load %arg6[%c0_10, %c0_11] : memref<128x128xf32, #tpu.memory_space<vmem>>, vector<128x128xf32>
      tpu.vector_store %arg6[%c0_10, %c0_11], %15 {strides = array<i32>} : memref<128x128xf32, #tpu.memory_space<vmem>>, vector<128x128xf32>,
    } else {
    }
    %c128_i32 = arith.constant 128 : i32
    %3 = arith.muli %arg1, %c128_i32 : i32
    %4 = tpu.assume_multiple %3, 128 : i32
    %5 = arith.index_cast %4 : i32 to index
    %c0 = arith.constant 0 : index
    %6 = vector.load %arg3[%5, %c0] : memref<128x128xbf16, #tpu.memory_space<vmem>>, vector<128x128xbf16>
    %c0_1 = arith.constant 0 : index
    %c0_2 = arith.constant 0 : index
    %7 = vector.load %arg6[%c0_1, %c0_2] : memref<128x128xf32, #tpu.memory_space<vmem>>, vector<128x128xf32>
    %c0_3 = arith.constant 0 : index
    %c0_4 = arith.constant 0 : index
    %8 = vector.load %arg2[%c0_3, %c0_4] : memref<128x128xbf16, #tpu.memory_space<vmem>>, vector<128x128xbf16>
    %cst = arith.constant dense<0.000000e+00> : vector<128x128xf32>
    %9 = tpu.matmul %8, %6, %cst {dimension_numbers = #tpu.dot_dimension_numbers<[1], [0], [0], [1], [0, 0, 1, 1], [], []>} : vector<128x128xbf16>, vector<128x128xbf16>, vector<128x128xf32> -> vector<128x128xf32>
    %10 = arith.addf %7, %9 : vector<128x128xf32>
    %c0_5 = arith.constant 0 : index
    %c0_6 = arith.constant 0 : index
    %11 = vector.load %arg6[%c0_5, %c0_6] : memref<128x128xf32, #tpu.memory_space<vmem>>, vector<128x128xf32>
    tpu.vector_store %arg6[%c0_5, %c0_6], %10 {strides = array<i32>} : memref<128x128xf32, #tpu.memory_space<vmem>>, vector<128x128xf32>,
    %c0_i32_7 = arith.constant 0 : i32
    %12 = arith.cmpi eq, %arg1, %c0_i32_7 : i32
    %13 = arith.extui %12 : i1 to i32
    %c0_i32_8 = arith.constant 0 : i32
    %14 = arith.cmpi ne, %13, %c0_i32_8 : i32
    scf.if %14 {
      %c0_9 = arith.constant 0 : index
      %c0_10 = arith.constant 0 : index
      %15 = vector.load %arg6[%c0_9, %c0_10] : memref<128x128xf32, #tpu.memory_space<vmem>>, vector<128x128xf32>
      %c0_11 = arith.constant 0 : index
      %c0_12 = arith.constant 0 : index
      %16 = vector.load %arg4[%c0_11, %c0_12] : memref<1x128xf32, #tpu.memory_space<vmem>>, vector<1x128xf32>
      %17 = vector.broadcast %16 : vector<1x128xf32> to vector<128x128xf32>
      %18 = arith.addf %15, %17 : vector<128x128xf32>
      %cst_13 = arith.constant 0.000000e+00 : f32
      %19 = vector.broadcast %cst_13 : f32 to vector<128x128xf32>
      %20 = arith.maximumf %18, %19 : vector<128x128xf32>
      %c0_14 = arith.constant 0 : index
      %c0_15 = arith.constant 0 : index
      %21 = vector.load %arg5[%c0_14, %c0_15] : memref<128x128xf32, #tpu.memory_space<vmem>>, vector<128x128xf32>
      tpu.vector_store %arg5[%c0_14, %c0_15], %20 {strides = array<i32>} : memref<128x128xf32, #tpu.memory_space<vmem>>, vector<128x128xf32>,
    } else {
    }
    return
  }
  func.func @transform_0(%arg0: i32, %arg1: i32) -> (i32, i32) {
    %c0_i32 = arith.constant 0 : i32
    return %arg0, %arg1 : i32, i32
  }
  func.func @transform_1(%arg0: i32, %arg1: i32) -> (i32, i32) {
    %c0_i32 = arith.constant 0 : i32
    %c0_i32_0 = arith.constant 0 : i32
    %c0_i32_1 = arith.constant 0 : i32
    return %c0_i32, %c0_i32_0 : i32, i32
  }
  func.func @transform_2(%arg0: i32, %arg1: i32) -> (i32, i32) {
    %c0_i32 = arith.constant 0 : i32
    %c0_i32_0 = arith.constant 0 : i32
    %c0_i32_1 = arith.constant 0 : i32
    return %c0_i32, %c0_i32_0 : i32, i32
  }
  func.func @transform_3(%arg0: i32, %arg1: i32) -> (i32, i32) {
    %c0_i32 = arith.constant 0 : i32
    %c0_i32_0 = arith.constant 0 : i32
    return %arg0, %c0_i32 : i32, i32
  }
}

</mosaic_0001>

<bundles_post_ra>
// kernel: gcn_en2_forward.5
= control target key start
LH: loop header
LB: loop body
LE: loop exit
PB: predicated region body
PF: predicated region fallthrough
CT: control target
= control target key end

     0   :  { %s728_s1 = inlined_call_operand.vmem [shape: bf16[128,128], index: 1, kind: input, shape index: {}]   ;;  %s729_s0 = inlined_call_operand.vmem [shape: bf16[128,128], index: 0, kind: input, shape index: {}]   ;;  %s730_s2 = inlined_call_operand.vmem [shape: f32[1,128], index: 2, kind: input, shape index: {}]   ;;  %s731_s3 = inlined_call_operand.vmem [shape: bf16[128,128], index: 3, kind: output, shape index: {}]  }
   0x1   :  { %v617_v0 = vld [vmem:[%s728_s1 + $0x38] sm:$0xff]   ;;  %v618_v1 = vld [vmem:[%s728_s1 + $0x30] sm:$0xff]   ;;  %v619_v2 = vld [vmem:[%s728_s1 + $0x28] sm:$0xff]  }
   0x2   :  { %569 = vmatprep.subr.bf16.mxu0 %v617_v0  ;;  %601 = vmatprep.subr.bf16.mxu1 %v617_v0  ;;  %v620_v3 = vld [vmem:[%s728_s1 + $0x20] sm:$0xff]   ;;  %v621_v6 = vld [vmem:[%s728_s1 + $0x18] sm:$0xff]   ;;  %v622_v7 = vld [vmem:[%s728_s1 + $0x10] sm:$0xff]  }
   0x3   :  { %570 = vmatpush3.bf16.msra.mxu0 %v617_v0  ;;  %609 = vmatpush3.bf16.msra.mxu1 %v617_v0  ;;  %v625_v4 = vld [vmem:[%s729_s0] sm:$0xff]   ;;  %v623_v8 = vld [vmem:[%s728_s1 + $0x8] sm:$0xff]   ;;  %v629_v12 = vld [vmem:[%s729_s0 + $0x10] sm:$0xff]  }
   0x4   :  { %571 = vmatprep.subr.bf16.mxu0 %v618_v1  ;;  %602 = vmatprep.subr.bf16.mxu1 %v618_v1  ;;  %v626_v5 = vld [vmem:[%s729_s0 + $0x20] sm:$0xff]   ;;  %v627_v10 = vld [vmem:[%s729_s0 + $0x8] sm:$0xff]   ;;  %v630_v13 = vld [vmem:[%s729_s0 + $0x30] sm:$0xff]  }
   0x5   :  { %585 = vmatprep.mubr.bf16.mxu0 %v625_v4  ;;  %593 = vmatprep.mubr.bf16.mxu1 %v626_v5  ;;  %v624_v9 = vld [vmem:[%s728_s1] sm:$0xff]   ;;  %v628_v11 = vld [vmem:[%s729_s0 + $0x28] sm:$0xff]   ;;  %v631_v14 = vld [vmem:[%s729_s0 + $0x18] sm:$0xff]  }
   0x6   :  { %v632_v15 = vld [vmem:[%s729_s0 + $0x38] sm:$0xff]   ;;  %v473_v16 = vld [vmem:[%s730_s2] ss:$0 sm:$0xff] }
   0x7   :  { %572 = vmatpush3.bf16.msra.mxu0 %v618_v1  ;;  %610 = vmatpush3.bf16.msra.mxu1 %v618_v1 }
   0x8   :  { %573 = vmatprep.subr.bf16.mxu0 %v619_v2  ;;  %603 = vmatprep.subr.bf16.mxu1 %v619_v2 }
   0xb   :  { %574 = vmatpush3.bf16.msra.mxu0 %v619_v2  ;;  %611 = vmatpush3.bf16.msra.mxu1 %v619_v2 }
   0xc   :  { %575 = vmatprep.subr.bf16.mxu0 %v620_v3  ;;  %604 = vmatprep.subr.bf16.mxu1 %v620_v3 }
   0xf   :  { %576 = vmatpush3.bf16.msra.mxu0 %v620_v3  ;;  %612 = vmatpush3.bf16.msra.mxu1 %v620_v3 }
  0x10   :  { %577 = vmatprep.subr.bf16.mxu0 %v621_v6  ;;  %605 = vmatprep.subr.bf16.mxu1 %v621_v6 }
  0x13   :  { %578 = vmatpush3.bf16.msra.mxu0 %v621_v6  ;;  %613 = vmatpush3.bf16.msra.mxu1 %v621_v6 }
  0x14   :  { %579 = vmatprep.subr.bf16.mxu0 %v622_v7  ;;  %606 = vmatprep.subr.bf16.mxu1 %v622_v7 }
  0x17   :  { %580 = vmatpush3.bf16.msra.mxu0 %v622_v7  ;;  %614 = vmatpush3.bf16.msra.mxu1 %v622_v7 }
  0x18   :  { %581 = vmatprep.subr.bf16.mxu0 %v623_v8  ;;  %607 = vmatprep.subr.bf16.mxu1 %v623_v8 }
  0x1b   :  { %582 = vmatpush3.bf16.msra.mxu0 %v623_v8  ;;  %615 = vmatpush3.bf16.msra.mxu1 %v623_v8 }
  0x1c   :  { %583 = vmatprep.subr.bf16.mxu0 %v624_v9  ;;  %608 = vmatprep.subr.bf16.mxu1 %v624_v9 }
  0x1f   :  { %584 = vmatpush3.bf16.msra.mxu0 %v624_v9  ;;  %616 = vmatpush3.bf16.msra.mxu1 %v624_v9 }
  0x22   :  { %586 = vmatmul.mubr.bf16.vlgmr.msra.gmra.mxu0 %v627_v10  ;;  %594 = vmatmul.mubr.bf16.vlgmr.msra.gmra.mxu1 %v628_v11 }
  0x23   :  { %589 = vmatprep.mubr.bf16.mxu0 %v629_v12  ;;  %597 = vmatprep.mubr.bf16.mxu1 %v630_v13 }
  0x2a   :  { %590 = vmatmul.mubr.bf16.gmra.mxu0 %v631_v14  ;;  %598 = vmatmul.mubr.bf16.gmra.mxu1 %v632_v15 }
  0xe2   :  { %v587_v17 = vpop.f32.mrf.mxu0  ;;  %v595_v18 = vpop.f32.mrf.mxu1 }
  0xe3   :  { %v341_v19 = vadd.f32 %v587_v17, %v473_v16  ;;  %v349_v20 = vadd.f32 %v595_v18, %v473_v16 }
  0xe4   :  { %v218_v21 = vpop.f32.mrf.mxu0  ;;  %v250_v22 = vpop.f32.mrf.mxu1 }
  0xe5   :  { %v339_v23 = vadd.f32 %v473_v16, %v218_v21  ;;  %v347_v24 = vadd.f32 %v473_v16, %v250_v22  ;;  %v357_v29 = vmax.f32 %v341_v19, 0.0  ;;  %v365_v30 = vmax.f32 %v349_v20, 0.0 }
  0xe6   :  { %v588_v25 = vpop.f32.mrf.mxu0  ;;  %v596_v26 = vpop.f32.mrf.mxu1 }
  0xe7   :  { %v342_v27 = vadd.f32 %v588_v25, %v473_v16  ;;  %v350_v28 = vadd.f32 %v596_v26, %v473_v16  ;;  %v355_v37 = vmax.f32 %v339_v23, 0.0  ;;  %v363_v38 = vmax.f32 %v347_v24, 0.0 }
  0xe8   :  { %v221_v31 = vpop.f32.mrf.mxu0  ;;  %v253_v32 = vpop.f32.mrf.mxu1 }
  0xe9   :  { %v358_v33 = vmax.f32 %v342_v27, 0.0  ;;  %v366_v34 = vmax.f32 %v350_v28, 0.0  ;;  %v340_v35 = vadd.f32 %v473_v16, %v221_v31  ;;  %v348_v36 = vadd.f32 %v473_v16, %v253_v32 }
  0xea   :  { %v591_v39 = vpop.f32.mrf.mxu0  ;;  %v599_v40 = vpop.f32.mrf.mxu1 }
  0xeb   :  { %v514_v41 = vpack.c.bf16 %v358_v33, %v357_v29  ;;  %v534_v42 = vpack.c.bf16 %v366_v34, %v365_v30  ;;  %v356_v43 = vmax.f32 %v340_v35, 0.0  ;;  %v364_v44 = vmax.f32 %v348_v36, 0.0 }
  0xec   :  { %v345_v45 = vadd.f32 %v591_v39, %v473_v16  ;;  %v353_v46 = vadd.f32 %v599_v40, %v473_v16  ;;  %v234_v47 = vpop.f32.mrf.mxu0  ;;  %v266_v48 = vpop.f32.mrf.mxu1 }
  0xed   :  { %546 = vst [vmem:[%s731_s3 + $0x8] sm:$0xff] %v514_v41   ;;  %550 = vst [vmem:[%s731_s3 + $0x28] sm:$0xff] %v534_v42   ;;  %v509_v49 = vpack.c.bf16 %v356_v43, %v355_v37  ;;  %v529_v50 = vpack.c.bf16 %v364_v44, %v363_v38  ;;  %v343_v51 = vadd.f32 %v473_v16, %v234_v47 }
  0xee   :  { %v351_v52 = vadd.f32 %v473_v16, %v266_v48  ;;  %v592_v53 = vpop.f32.mrf.mxu0  ;;  %v600_v54 = vpop.f32.mrf.mxu1  ;;  %v361_v57 = vmax.f32 %v345_v45, 0.0  ;;  %v369_v58 = vmax.f32 %v353_v46, 0.0 }
  0xef   :  { %510 = vst [vmem:[%s731_s3] sm:$0xff] %v509_v49   ;;  %549 = vst [vmem:[%s731_s3 + $0x20] sm:$0xff] %v529_v50   ;;  %v346_v55 = vadd.f32 %v592_v53, %v473_v16  ;;  %v354_v56 = vadd.f32 %v600_v54, %v473_v16  ;;  %v359_v1 = vmax.f32 %v343_v51, 0.0 }
  0xf0   :  { %v237_v59 = vpop.f32.mrf.mxu0  ;;  %v269_v60 = vpop.f32.mrf.mxu1  ;;  %v367_v2 = vmax.f32 %v351_v52, 0.0 }
  0xf1   :  { %v362_v61 = vmax.f32 %v346_v55, 0.0  ;;  %v370_v62 = vmax.f32 %v354_v56, 0.0  ;;  %v344_v63 = vadd.f32 %v473_v16, %v237_v59  ;;  %v352_v0 = vadd.f32 %v473_v16, %v269_v60 }
  0xf3   :  { %v524_v3 = vpack.c.bf16 %v362_v61, %v361_v57  ;;  %v544_v4 = vpack.c.bf16 %v370_v62, %v369_v58  ;;  %v360_v5 = vmax.f32 %v344_v63, 0.0  ;;  %v368_v6 = vmax.f32 %v352_v0, 0.0 }
  0xf5   :  { %548 = vst [vmem:[%s731_s3 + $0x18] sm:$0xff] %v524_v3   ;;  %552 = vst [vmem:[%s731_s3 + $0x38] sm:$0xff] %v544_v4   ;;  %v519_v7 = vpack.c.bf16 %v360_v5, %v359_v1  ;;  %v539_v8 = vpack.c.bf16 %v368_v6, %v367_v2 }
  0xf7   :  { %547 = vst [vmem:[%s731_s3 + $0x10] sm:$0xff] %v519_v7   ;;  %551 = vst [vmem:[%s731_s3 + $0x30] sm:$0xff] %v539_v8  }

// kernel: gcn_en2_forward.4
= control target key start
LH: loop header
LB: loop body
LE: loop exit
PB: predicated region body
PF: predicated region fallthrough
CT: control target
= control target key end

     0   :  { %vm84_vm0 = vcmask 261120   ;;  %s508_s1 = inlined_call_operand.vmem [shape: bf16[32,128], index: 1, kind: input, shape index: {}]   ;;  %s509_s0 = inlined_call_operand.vmem [shape: bf16[128,32], index: 0, kind: input, shape index: {}]   ;;  %s510_s2 = inlined_call_operand.vmem [shape: bf16[128,128], index: 2, kind: output, shape index: {}]  }
   0x1   :  { %v421_v0 = vld [vmem:[%s508_s1 + $0x8] sm:$0xff]   ;;  %v422_v1 = vld [vmem:[%s508_s1] sm:$0xff]   ;;  %v427_v6 = vld [vmem:[%s509_s0 + $0x10] sm:$0xff]  }
   0x2   :  { %397 = vmatprep.subr.bf16.mxu0 %v421_v0  ;;  %417 = vmatprep.subr.bf16.mxu1 %v421_v0  ;;  %v423_v2 = vld [vmem:[%s509_s0] sm:$0xff]   ;;  %v425_v4 = vld [vmem:[%s509_s0 + $0x8] sm:$0xff]   ;;  %v428_v7 = vld [vmem:[%s509_s0 + $0x30] sm:$0xff]  }
   0x3   :  { %398 = vmatpush3.bf16.msra.mxu0 %v421_v0  ;;  %419 = vmatpush3.bf16.msra.mxu1 %v421_v0  ;;  %v424_v3 = vld [vmem:[%s509_s0 + $0x20] sm:$0xff]   ;;  %v426_v5 = vld [vmem:[%s509_s0 + $0x28] sm:$0xff]   ;;  %v429_v8 = vld [vmem:[%s509_s0 + $0x18] sm:$0xff]  }
   0x4   :  { %399 = vmatprep.subr.bf16.mxu0 %v422_v1  ;;  %418 = vmatprep.subr.bf16.mxu1 %v422_v1  ;;  %v430_v9 = vld [vmem:[%s509_s0 + $0x38] sm:$0xff]  }
   0x5   :  { %401 = vmatprep.mubr.msk.bf16.mxu0 %vm84_vm0, %v423_v2  ;;  %409 = vmatprep.mubr.msk.bf16.mxu1 %vm84_vm0, %v424_v3 }
   0x7   :  { %400 = vmatpush3.bf16.msra.mxu0 %v422_v1  ;;  %420 = vmatpush3.bf16.msra.mxu1 %v422_v1 }
   0xa   :  { %402 = vmatmul.mubr.msk.bf16.vlgmr.msra.gmra.mxu0 %vm84_vm0, %v425_v4  ;;  %410 = vmatmul.mubr.msk.bf16.vlgmr.msra.gmra.mxu1 %vm84_vm0, %v426_v5 }
   0xb   :  { %405 = vmatprep.mubr.msk.bf16.mxu0 %vm84_vm0, %v427_v6  ;;  %413 = vmatprep.mubr.msk.bf16.mxu1 %vm84_vm0, %v428_v7 }
  0x12   :  { %406 = vmatmul.mubr.msk.bf16.gmra.mxu0 %vm84_vm0, %v429_v8  ;;  %414 = vmatmul.mubr.msk.bf16.gmra.mxu1 %vm84_vm0, %v430_v9 }
  0xca   :  { %v403_v10 = vpop.f32.mrf.mxu0  ;;  %v411_v11 = vpop.f32.mrf.mxu1 }
  0xcc   :  { %v143_v12 = vpop.f32.mrf.mxu0  ;;  %v175_v13 = vpop.f32.mrf.mxu1 }
  0xce   :  { %v404_v14 = vpop.f32.mrf.mxu0  ;;  %v412_v15 = vpop.f32.mrf.mxu1 }
  0xcf   :  { %v348_v16 = vpack.c.bf16 %v404_v14, %v403_v10  ;;  %v368_v17 = vpack.c.bf16 %v412_v15, %v411_v11 }
  0xd0   :  { %v146_v18 = vpop.f32.mrf.mxu0  ;;  %v178_v19 = vpop.f32.mrf.mxu1 }
  0xd1   :  { %380 = vst [vmem:[%s510_s2 + $0x8] sm:$0xff] %v348_v16   ;;  %384 = vst [vmem:[%s510_s2 + $0x28] sm:$0xff] %v368_v17   ;;  %v343_v20 = vpack.c.bf16 %v146_v18, %v143_v12  ;;  %v363_v21 = vpack.c.bf16 %v178_v19, %v175_v13 }
  0xd2   :  { %v407_v22 = vpop.f32.mrf.mxu0  ;;  %v415_v23 = vpop.f32.mrf.mxu1 }
  0xd3   :  { %344 = vst [vmem:[%s510_s2] sm:$0xff] %v343_v20   ;;  %383 = vst [vmem:[%s510_s2 + $0x20] sm:$0xff] %v363_v21  }
  0xd4   :  { %v159_v24 = vpop.f32.mrf.mxu0  ;;  %v191_v25 = vpop.f32.mrf.mxu1 }
  0xd6   :  { %v408_v26 = vpop.f32.mrf.mxu0  ;;  %v416_v27 = vpop.f32.mrf.mxu1 }
  0xd7   :  { %v358_v28 = vpack.c.bf16 %v408_v26, %v407_v22  ;;  %v378_v29 = vpack.c.bf16 %v416_v27, %v415_v23 }
  0xd8   :  { %v162_v30 = vpop.f32.mrf.mxu0  ;;  %v194_v31 = vpop.f32.mrf.mxu1 }
  0xd9   :  { %382 = vst [vmem:[%s510_s2 + $0x18] sm:$0xff] %v358_v28   ;;  %386 = vst [vmem:[%s510_s2 + $0x38] sm:$0xff] %v378_v29   ;;  %v353_v32 = vpack.c.bf16 %v162_v30, %v159_v24  ;;  %v373_v33 = vpack.c.bf16 %v194_v31, %v191_v25 }
  0xdb   :  { %381 = vst [vmem:[%s510_s2 + $0x10] sm:$0xff] %v353_v32   ;;  %385 = vst [vmem:[%s510_s2 + $0x30] sm:$0xff] %v373_v33  }

// kernel: gcn_en2_forward.7
= control target key start
LH: loop header
LB: loop body
LE: loop exit
PB: predicated region body
PF: predicated region fallthrough
CT: control target
= control target key end

     0   :  { %s609_s1 = inlined_call_operand.vmem [shape: bf16[128,128], index: 1, kind: input, shape index: {}]   ;;  %s610_s0 = inlined_call_operand.vmem [shape: bf16[128,128], index: 0, kind: input, shape index: {}]   ;;  %s611_s2 = inlined_call_operand.vmem [shape: f32[1,128], index: 2, kind: input, shape index: {}]   ;;  %s612_s3 = inlined_call_operand.vmem [shape: f32[128,128], index: 3, kind: output, shape index: {}]  }
   0x1   :  { %v474_v0 = vld [vmem:[%s609_s1 + $0x38] sm:$0xff]   ;;  %v475_v1 = vld [vmem:[%s609_s1 + $0x30] sm:$0xff]   ;;  %v476_v2 = vld [vmem:[%s609_s1 + $0x28] sm:$0xff]  }
   0x2   :  { %426 = vmatprep.subr.bf16.mxu0 %v474_v0  ;;  %458 = vmatprep.subr.bf16.mxu1 %v474_v0  ;;  %v477_v3 = vld [vmem:[%s609_s1 + $0x20] sm:$0xff]   ;;  %v478_v6 = vld [vmem:[%s609_s1 + $0x18] sm:$0xff]   ;;  %v479_v7 = vld [vmem:[%s609_s1 + $0x10] sm:$0xff]  }
   0x3   :  { %427 = vmatpush3.bf16.msra.mxu0 %v474_v0  ;;  %466 = vmatpush3.bf16.msra.mxu1 %v474_v0  ;;  %v482_v4 = vld [vmem:[%s610_s0] sm:$0xff]   ;;  %v480_v8 = vld [vmem:[%s609_s1 + $0x8] sm:$0xff]   ;;  %v486_v12 = vld [vmem:[%s610_s0 + $0x10] sm:$0xff]  }
   0x4   :  { %428 = vmatprep.subr.bf16.mxu0 %v475_v1  ;;  %459 = vmatprep.subr.bf16.mxu1 %v475_v1  ;;  %v483_v5 = vld [vmem:[%s610_s0 + $0x20] sm:$0xff]   ;;  %v484_v10 = vld [vmem:[%s610_s0 + $0x8] sm:$0xff]   ;;  %v487_v13 = vld [vmem:[%s610_s0 + $0x30] sm:$0xff]  }
   0x5   :  { %442 = vmatprep.mubr.bf16.mxu0 %v482_v4  ;;  %450 = vmatprep.mubr.bf16.mxu1 %v483_v5  ;;  %v481_v9 = vld [vmem:[%s609_s1] sm:$0xff]   ;;  %v485_v11 = vld [vmem:[%s610_s0 + $0x28] sm:$0xff]   ;;  %v488_v14 = vld [vmem:[%s610_s0 + $0x18] sm:$0xff]  }
   0x6   :  { %v489_v15 = vld [vmem:[%s610_s0 + $0x38] sm:$0xff]   ;;  %v409_v16 = vld [vmem:[%s611_s2] ss:$0 sm:$0xff] }
   0x7   :  { %429 = vmatpush3.bf16.msra.mxu0 %v475_v1  ;;  %467 = vmatpush3.bf16.msra.mxu1 %v475_v1 }
   0x8   :  { %430 = vmatprep.subr.bf16.mxu0 %v476_v2  ;;  %460 = vmatprep.subr.bf16.mxu1 %v476_v2 }
   0xb   :  { %431 = vmatpush3.bf16.msra.mxu0 %v476_v2  ;;  %468 = vmatpush3.bf16.msra.mxu1 %v476_v2 }
   0xc   :  { %432 = vmatprep.subr.bf16.mxu0 %v477_v3  ;;  %461 = vmatprep.subr.bf16.mxu1 %v477_v3 }
   0xf   :  { %433 = vmatpush3.bf16.msra.mxu0 %v477_v3  ;;  %469 = vmatpush3.bf16.msra.mxu1 %v477_v3 }
  0x10   :  { %434 = vmatprep.subr.bf16.mxu0 %v478_v6  ;;  %462 = vmatprep.subr.bf16.mxu1 %v478_v6 }
  0x13   :  { %435 = vmatpush3.bf16.msra.mxu0 %v478_v6  ;;  %470 = vmatpush3.bf16.msra.mxu1 %v478_v6 }
  0x14   :  { %436 = vmatprep.subr.bf16.mxu0 %v479_v7  ;;  %463 = vmatprep.subr.bf16.mxu1 %v479_v7 }
  0x17   :  { %437 = vmatpush3.bf16.msra.mxu0 %v479_v7  ;;  %471 = vmatpush3.bf16.msra.mxu1 %v479_v7 }
  0x18   :  { %438 = vmatprep.subr.bf16.mxu0 %v480_v8  ;;  %464 = vmatprep.subr.bf16.mxu1 %v480_v8 }
  0x1b   :  { %439 = vmatpush3.bf16.msra.mxu0 %v480_v8  ;;  %472 = vmatpush3.bf16.msra.mxu1 %v480_v8 }
  0x1c   :  { %440 = vmatprep.subr.bf16.mxu0 %v481_v9  ;;  %465 = vmatprep.subr.bf16.mxu1 %v481_v9 }
  0x1f   :  { %441 = vmatpush3.bf16.msra.mxu0 %v481_v9  ;;  %473 = vmatpush3.bf16.msra.mxu1 %v481_v9 }
  0x22   :  { %443 = vmatmul.mubr.bf16.vlgmr.msra.gmra.mxu0 %v484_v10  ;;  %451 = vmatmul.mubr.bf16.vlgmr.msra.gmra.mxu1 %v485_v11 }
  0x23   :  { %446 = vmatprep.mubr.bf16.mxu0 %v486_v12  ;;  %454 = vmatprep.mubr.bf16.mxu1 %v487_v13 }
  0x2a   :  { %447 = vmatmul.mubr.bf16.gmra.mxu0 %v488_v14  ;;  %455 = vmatmul.mubr.bf16.gmra.mxu1 %v489_v15 }
  0xe2   :  { %v444_v17 = vpop.f32.mrf.mxu0  ;;  %v452_v18 = vpop.f32.mrf.mxu1 }
  0xe3   :  { %v341_v19 = vadd.f32 %v444_v17, %v409_v16  ;;  %v349_v20 = vadd.f32 %v452_v18, %v409_v16 }
  0xe4   :  { %v218_v21 = vpop.f32.mrf.mxu0  ;;  %v250_v22 = vpop.f32.mrf.mxu1 }
  0xe5   :  { %v357_v23 = vmax.f32 %v341_v19, 0.0  ;;  %v365_v24 = vmax.f32 %v349_v20, 0.0  ;;  %v339_v25 = vadd.f32 %v409_v16, %v218_v21  ;;  %v347_v26 = vadd.f32 %v409_v16, %v250_v22 }
  0xe6   :  { %v445_v27 = vpop.f32.mrf.mxu0  ;;  %v453_v28 = vpop.f32.mrf.mxu1 }
  0xe7   :  { %373 = vst [vmem:[%s612_s3 + $0x10] sm:$0xff] %v357_v23  ;;  %381 = vst [vmem:[%s612_s3 + $0x50] sm:$0xff] %v365_v24  ;;  %v355_v29 = vmax.f32 %v339_v25, 0.0  ;;  %v363_v30 = vmax.f32 %v347_v26, 0.0  ;;  %v342_v31 = vadd.f32 %v445_v27, %v409_v16  ;;  %v350_v32 = vadd.f32 %v453_v28, %v409_v16 }
  0xe8   :  { %v221_v33 = vpop.f32.mrf.mxu0  ;;  %v253_v34 = vpop.f32.mrf.mxu1 }
  0xe9   :  { %371 = vst [vmem:[%s612_s3] sm:$0xff] %v355_v29  ;;  %379 = vst [vmem:[%s612_s3 + $0x40] sm:$0xff] %v363_v30  ;;  %v358_v35 = vmax.f32 %v342_v31, 0.0  ;;  %v366_v36 = vmax.f32 %v350_v32, 0.0  ;;  %v340_v37 = vadd.f32 %v409_v16, %v221_v33  ;;  %v348_v38 = vadd.f32 %v409_v16, %v253_v34 }
  0xea   :  { %v448_v39 = vpop.f32.mrf.mxu0  ;;  %v456_v40 = vpop.f32.mrf.mxu1 }
  0xeb   :  { %374 = vst [vmem:[%s612_s3 + $0x18] sm:$0xff] %v358_v35  ;;  %382 = vst [vmem:[%s612_s3 + $0x58] sm:$0xff] %v366_v36  ;;  %v356_v41 = vmax.f32 %v340_v37, 0.0  ;;  %v364_v42 = vmax.f32 %v348_v38, 0.0  ;;  %v345_v43 = vadd.f32 %v448_v39, %v409_v16  ;;  %v353_v44 = vadd.f32 %v456_v40, %v409_v16 }
  0xec   :  { %v234_v45 = vpop.f32.mrf.mxu0  ;;  %v266_v46 = vpop.f32.mrf.mxu1 }
  0xed   :  { %372 = vst [vmem:[%s612_s3 + $0x8] sm:$0xff] %v356_v41  ;;  %380 = vst [vmem:[%s612_s3 + $0x48] sm:$0xff] %v364_v42  ;;  %v361_v47 = vmax.f32 %v345_v43, 0.0  ;;  %v369_v48 = vmax.f32 %v353_v44, 0.0  ;;  %v343_v49 = vadd.f32 %v409_v16, %v234_v45  ;;  %v351_v50 = vadd.f32 %v409_v16, %v266_v46 }
  0xee   :  { %v449_v51 = vpop.f32.mrf.mxu0  ;;  %v457_v52 = vpop.f32.mrf.mxu1 }
  0xef   :  { %377 = vst [vmem:[%s612_s3 + $0x30] sm:$0xff] %v361_v47  ;;  %385 = vst [vmem:[%s612_s3 + $0x70] sm:$0xff] %v369_v48  ;;  %v359_v53 = vmax.f32 %v343_v49, 0.0  ;;  %v367_v54 = vmax.f32 %v351_v50, 0.0  ;;  %v346_v55 = vadd.f32 %v449_v51, %v409_v16  ;;  %v354_v56 = vadd.f32 %v457_v52, %v409_v16 }
  0xf0   :  { %v237_v57 = vpop.f32.mrf.mxu0  ;;  %v269_v58 = vpop.f32.mrf.mxu1 }
  0xf1   :  { %375 = vst [vmem:[%s612_s3 + $0x20] sm:$0xff] %v359_v53  ;;  %383 = vst [vmem:[%s612_s3 + $0x60] sm:$0xff] %v367_v54  ;;  %v362_v59 = vmax.f32 %v346_v55, 0.0  ;;  %v370_v60 = vmax.f32 %v354_v56, 0.0  ;;  %v344_v61 = vadd.f32 %v409_v16, %v237_v57  ;;  %v352_v62 = vadd.f32 %v409_v16, %v269_v58 }
  0xf3   :  { %378 = vst [vmem:[%s612_s3 + $0x38] sm:$0xff] %v362_v59  ;;  %386 = vst [vmem:[%s612_s3 + $0x78] sm:$0xff] %v370_v60  ;;  %v360_v63 = vmax.f32 %v344_v61, 0.0  ;;  %v368_v0 = vmax.f32 %v352_v62, 0.0 }
  0xf5   :  { %376 = vst [vmem:[%s612_s3 + $0x28] sm:$0xff] %v360_v63  ;;  %384 = vst [vmem:[%s612_s3 + $0x68] sm:$0xff] %v368_v0 }

// kernel: gcn_en2_forward.6
= control target key start
LH: loop header
LB: loop body
LE: loop exit
PB: predicated region body
PF: predicated region fallthrough
CT: control target
= control target key end

     0   :  { %s583_s1 = inlined_call_operand.vmem [shape: bf16[128,128], index: 1, kind: input, shape index: {}]   ;;  %s584_s0 = inlined_call_operand.vmem [shape: bf16[128,128], index: 0, kind: input, shape index: {}]   ;;  %s585_s2 = inlined_call_operand.vmem [shape: bf16[128,128], index: 2, kind: output, shape index: {}]  }
   0x1   :  { %v480_v0 = vld [vmem:[%s583_s1 + $0x38] sm:$0xff]   ;;  %v481_v1 = vld [vmem:[%s583_s1 + $0x30] sm:$0xff]   ;;  %v482_v2 = vld [vmem:[%s583_s1 + $0x28] sm:$0xff]  }
   0x2   :  { %432 = vmatprep.subr.bf16.mxu0 %v480_v0  ;;  %464 = vmatprep.subr.bf16.mxu1 %v480_v0  ;;  %v483_v3 = vld [vmem:[%s583_s1 + $0x20] sm:$0xff]   ;;  %v484_v6 = vld [vmem:[%s583_s1 + $0x18] sm:$0xff]   ;;  %v485_v7 = vld [vmem:[%s583_s1 + $0x10] sm:$0xff]  }
   0x3   :  { %433 = vmatpush3.bf16.msra.mxu0 %v480_v0  ;;  %472 = vmatpush3.bf16.msra.mxu1 %v480_v0  ;;  %v488_v4 = vld [vmem:[%s584_s0] sm:$0xff]   ;;  %v486_v8 = vld [vmem:[%s583_s1 + $0x8] sm:$0xff]   ;;  %v492_v12 = vld [vmem:[%s584_s0 + $0x10] sm:$0xff]  }
   0x4   :  { %434 = vmatprep.subr.bf16.mxu0 %v481_v1  ;;  %465 = vmatprep.subr.bf16.mxu1 %v481_v1  ;;  %v489_v5 = vld [vmem:[%s584_s0 + $0x20] sm:$0xff]   ;;  %v490_v10 = vld [vmem:[%s584_s0 + $0x8] sm:$0xff]   ;;  %v493_v13 = vld [vmem:[%s584_s0 + $0x30] sm:$0xff]  }
   0x5   :  { %448 = vmatprep.mubr.bf16.mxu0 %v488_v4  ;;  %456 = vmatprep.mubr.bf16.mxu1 %v489_v5  ;;  %v487_v9 = vld [vmem:[%s583_s1] sm:$0xff]   ;;  %v491_v11 = vld [vmem:[%s584_s0 + $0x28] sm:$0xff]   ;;  %v494_v14 = vld [vmem:[%s584_s0 + $0x18] sm:$0xff]  }
   0x6   :  { %v495_v15 = vld [vmem:[%s584_s0 + $0x38] sm:$0xff]  }
   0x7   :  { %435 = vmatpush3.bf16.msra.mxu0 %v481_v1  ;;  %473 = vmatpush3.bf16.msra.mxu1 %v481_v1 }
   0x8   :  { %436 = vmatprep.subr.bf16.mxu0 %v482_v2  ;;  %466 = vmatprep.subr.bf16.mxu1 %v482_v2 }
   0xb   :  { %437 = vmatpush3.bf16.msra.mxu0 %v482_v2  ;;  %474 = vmatpush3.bf16.msra.mxu1 %v482_v2 }
   0xc   :  { %438 = vmatprep.subr.bf16.mxu0 %v483_v3  ;;  %467 = vmatprep.subr.bf16.mxu1 %v483_v3 }
   0xf   :  { %439 = vmatpush3.bf16.msra.mxu0 %v483_v3  ;;  %475 = vmatpush3.bf16.msra.mxu1 %v483_v3 }
  0x10   :  { %440 = vmatprep.subr.bf16.mxu0 %v484_v6  ;;  %468 = vmatprep.subr.bf16.mxu1 %v484_v6 }
  0x13   :  { %441 = vmatpush3.bf16.msra.mxu0 %v484_v6  ;;  %476 = vmatpush3.bf16.msra.mxu1 %v484_v6 }
  0x14   :  { %442 = vmatprep.subr.bf16.mxu0 %v485_v7  ;;  %469 = vmatprep.subr.bf16.mxu1 %v485_v7 }
  0x17   :  { %443 = vmatpush3.bf16.msra.mxu0 %v485_v7  ;;  %477 = vmatpush3.bf16.msra.mxu1 %v485_v7 }
  0x18   :  { %444 = vmatprep.subr.bf16.mxu0 %v486_v8  ;;  %470 = vmatprep.subr.bf16.mxu1 %v486_v8 }
  0x1b   :  { %445 = vmatpush3.bf16.msra.mxu0 %v486_v8  ;;  %478 = vmatpush3.bf16.msra.mxu1 %v486_v8 }
  0x1c   :  { %446 = vmatprep.subr.bf16.mxu0 %v487_v9  ;;  %471 = vmatprep.subr.bf16.mxu1 %v487_v9 }
  0x1f   :  { %447 = vmatpush3.bf16.msra.mxu0 %v487_v9  ;;  %479 = vmatpush3.bf16.msra.mxu1 %v487_v9 }
  0x22   :  { %449 = vmatmul.mubr.bf16.vlgmr.msra.gmra.mxu0 %v490_v10  ;;  %457 = vmatmul.mubr.bf16.vlgmr.msra.gmra.mxu1 %v491_v11 }
  0x23   :  { %452 = vmatprep.mubr.bf16.mxu0 %v492_v12  ;;  %460 = vmatprep.mubr.bf16.mxu1 %v493_v13 }
  0x2a   :  { %453 = vmatmul.mubr.bf16.gmra.mxu0 %v494_v14  ;;  %461 = vmatmul.mubr.bf16.gmra.mxu1 %v495_v15 }
  0xe2   :  { %v450_v16 = vpop.f32.mrf.mxu0  ;;  %v458_v17 = vpop.f32.mrf.mxu1 }
  0xe4   :  { %v174_v18 = vpop.f32.mrf.mxu0  ;;  %v206_v19 = vpop.f32.mrf.mxu1 }
  0xe6   :  { %v451_v20 = vpop.f32.mrf.mxu0  ;;  %v459_v21 = vpop.f32.mrf.mxu1 }
  0xe7   :  { %v377_v22 = vpack.c.bf16 %v451_v20, %v450_v16  ;;  %v397_v23 = vpack.c.bf16 %v459_v21, %v458_v17 }
  0xe8   :  { %v177_v24 = vpop.f32.mrf.mxu0  ;;  %v209_v25 = vpop.f32.mrf.mxu1 }
  0xe9   :  { %409 = vst [vmem:[%s585_s2 + $0x8] sm:$0xff] %v377_v22   ;;  %413 = vst [vmem:[%s585_s2 + $0x28] sm:$0xff] %v397_v23   ;;  %v372_v26 = vpack.c.bf16 %v177_v24, %v174_v18  ;;  %v392_v27 = vpack.c.bf16 %v209_v25, %v206_v19 }
  0xea   :  { %v454_v28 = vpop.f32.mrf.mxu0  ;;  %v462_v29 = vpop.f32.mrf.mxu1 }
  0xeb   :  { %373 = vst [vmem:[%s585_s2] sm:$0xff] %v372_v26   ;;  %412 = vst [vmem:[%s585_s2 + $0x20] sm:$0xff] %v392_v27  }
  0xec   :  { %v190_v30 = vpop.f32.mrf.mxu0  ;;  %v222_v31 = vpop.f32.mrf.mxu1 }
  0xee   :  { %v455_v32 = vpop.f32.mrf.mxu0  ;;  %v463_v33 = vpop.f32.mrf.mxu1 }
  0xef   :  { %v387_v34 = vpack.c.bf16 %v455_v32, %v454_v28  ;;  %v407_v35 = vpack.c.bf16 %v463_v33, %v462_v29 }
  0xf0   :  { %v193_v36 = vpop.f32.mrf.mxu0  ;;  %v225_v37 = vpop.f32.mrf.mxu1 }
  0xf1   :  { %411 = vst [vmem:[%s585_s2 + $0x18] sm:$0xff] %v387_v34   ;;  %415 = vst [vmem:[%s585_s2 + $0x38] sm:$0xff] %v407_v35   ;;  %v382_v38 = vpack.c.bf16 %v193_v36, %v190_v30  ;;  %v402_v39 = vpack.c.bf16 %v225_v37, %v222_v31 }
  0xf3   :  { %410 = vst [vmem:[%s585_s2 + $0x10] sm:$0xff] %v382_v38   ;;  %414 = vst [vmem:[%s585_s2 + $0x30] sm:$0xff] %v402_v39  }

</bundles_post_ra>
